<compile_context>
chip_gen: v7x
topology: tpu7x:2x2x1
jax: 0.10.0
libtpu: 0.0.40
codegen_flags: <defaults>
</compile_context>

<pallas_src>
import functools

import jax
import jax.numpy as jnp
from jax.experimental import pallas as pl
from jax.experimental.pallas import tpu as pltpu

LANE = 128            # TPU lane width: output feature dim padded to a multiple of this
SUBLANE = 8           # f32 sublane granularity for batch tiles
TILE_B_TARGET = 256   # batch tile for large batches (fills the MXU M dimension)


def _round_up(n, m):
    return ((n + m - 1) // m) * m


def _silu(v):
    return v * jax.nn.sigmoid(v)


def _resblock_kernel(x_ref, t_ref,
                     w1m_ref, b1m_ref,   # fused [dense1 | modify_x]: (in, 2*Np) bf16 / (1, 2*Np) f32
                     wt_ref, bt_ref,     # time_mlp:  (t_dim, Np) bf16 / (1, Np) f32
                     w2_ref, b2_ref,     # dense2:    (Np, Np)    bf16 / (1, Np) f32
                     o_ref):
    n = w2_ref.shape[0]  # padded output dim (multiple of 128), static

    # ---- fused dense1 + modify_x: one MXU matmul on the shared operand x ----
    x_bf = x_ref[...].astype(jnp.bfloat16)
    xw = jnp.dot(x_bf, w1m_ref[...], preferred_element_type=jnp.float32) + b1m_ref[...]
    h_x = _silu(xw[:, :n])   # dense1 branch: SiLU(x @ W1 + b1), f32 math
    res = xw[:, n:]          # modify_x residual branch: x @ Wm + bm

    # ---- time_mlp: SiLU(t) @ Wt + bt  (SiLU in f32, matmul operand bf16) ----
    t_act = _silu(t_ref[...].astype(jnp.float32))
    h_t = jnp.dot(t_act.astype(jnp.bfloat16), wt_ref[...],
                  preferred_element_type=jnp.float32) + bt_ref[...]

    h1 = h_x + h_t

    # ---- dense2: SiLU(h1 @ W2 + b2) ----
    h2 = jnp.dot(h1.astype(jnp.bfloat16), w2_ref[...],
                 preferred_element_type=jnp.float32) + b2_ref[...]
    h2 = _silu(h2)

    o_ref[...] = (h2 + res).astype(o_ref.dtype)


def pack_params(params, input_dim, output_dim):
    """Pad output features to a lane multiple, fuse (W1 | Wm), cast weights to bf16."""
    n_pad = _round_up(output_dim, LANE)
    pad_n = n_pad - output_dim

    def pad_w(w):
        return jnp.pad(w, ((0, 0), (0, pad_n)))

    def pad_b(b):
        return jnp.pad(jnp.reshape(b, (1, output_dim)), ((0, 0), (0, pad_n)))

    w1, b1 = pad_w(params["w1"]), pad_b(params["b1"])
    wt, bt = pad_w(params["wt"]), pad_b(params["bt"])
    w2 = jnp.pad(params["w2"], ((0, pad_n), (0, pad_n)))
    b2 = pad_b(params["b2"])

    if params.get("wm", None) is not None:
        wm, bm = pad_w(params["wm"]), pad_b(params["bm"])
    else:
        # modify_x == nn.Identity() (input_dim == output_dim): residual = x @ I + 0
        wm = pad_w(jnp.eye(input_dim, output_dim, dtype=jnp.float32))
        bm = jnp.zeros((1, n_pad), jnp.float32)

    return {
        "w1m": jnp.concatenate([w1, wm], axis=1).astype(jnp.bfloat16),  # (in, 2*Np)
        "b1m": jnp.concatenate([b1, bm], axis=1).astype(jnp.float32),   # (1, 2*Np)
        "wt": wt.astype(jnp.bfloat16), "bt": bt.astype(jnp.float32),
        "w2": w2.astype(jnp.bfloat16), "b2": b2.astype(jnp.float32),
        "n_pad": n_pad, "output_dim": output_dim,
    }


def temporal_spatial_resblock(x, t, packed):
    """x: (B, input_dim), t: (B, t_dim) -> (B, output_dim)  float32."""
    B, input_dim = x.shape
    t_dim = t.shape[1]
    n_pad = int(packed["n_pad"])
    output_dim = int(packed["output_dim"])

    # Batch tiling: big batches use TILE_B_TARGET tiles, small ones a single sublane-aligned tile.
    tile_b = TILE_B_TARGET if B >= TILE_B_TARGET else _round_up(B, SUBLANE)
    b_pad = _round_up(B, tile_b)
    if b_pad != B:
        x = jnp.pad(x, ((0, b_pad - B), (0, 0)))
        t = jnp.pad(t, ((0, b_pad - B), (0, 0)))
    grid = (b_pad // tile_b,)

    # VMEM budget hint: resident weights + double-buffered activation tiles + f32 intermediates.
    weight_bytes = 2 * (packed["w1m"].size + packed["wt"].size + packed["w2"].size) \
        + 4 * (packed["b1m"].size + packed["bt"].size + packed["b2"].size)
    act_bytes = 2 * tile_b * (input_dim + t_dim + n_pad) * 4      # double-buffered x/t/out tiles
    scratch_bytes = 8 * tile_b * n_pad * 4                        # f32 intermediates headroom
    vmem_limit = int(min(max(4 * (weight_bytes + act_bytes + scratch_bytes),
                             32 * 1024 * 1024),
                         48 * 1024 * 1024))                       # stay under v7x's 64 MiB VMEM

    flops = 2 * b_pad * (input_dim * 2 * n_pad + t_dim * n_pad + n_pad * n_pad)
    transcendentals = b_pad * (t_dim + 2 * n_pad)                 # sigmoids
    bytes_accessed = (x.size + t.size) * 4 + weight_bytes + b_pad * n_pad * 4

    out = pl.pallas_call(
        _resblock_kernel,
        out_shape=jax.ShapeDtypeStruct((b_pad, n_pad), jnp.float32),
        grid_spec=pltpu.PrefetchScalarGridSpec(
            num_scalar_prefetch=0,
            grid=grid,
            in_specs=[
                pl.BlockSpec((tile_b, input_dim), lambda i: (i, 0)),   # x tile
                pl.BlockSpec((tile_b, t_dim), lambda i: (i, 0)),       # t tile
                pl.BlockSpec((input_dim, 2 * n_pad), lambda i: (0, 0)),  # fused W1|Wm (resident)
                pl.BlockSpec((1, 2 * n_pad), lambda i: (0, 0)),
                pl.BlockSpec((t_dim, n_pad), lambda i: (0, 0)),          # Wt (resident)
                pl.BlockSpec((1, n_pad), lambda i: (0, 0)),
                pl.BlockSpec((n_pad, n_pad), lambda i: (0, 0)),          # W2 (resident)
                pl.BlockSpec((1, n_pad), lambda i: (0, 0)),
            ],
            out_specs=pl.BlockSpec((tile_b, n_pad), lambda i: (i, 0)),
        ),
        compiler_params=pltpu.CompilerParams(
            dimension_semantics=("parallel",),      # 2 TCs on v7x shard the batch axis
            vmem_limit_bytes=vmem_limit,
        ),
        cost_estimate=pl.CostEstimate(
            flops=int(flops),
            transcendentals=int(transcendentals),
            bytes_accessed=int(bytes_accessed),
        ),
    )(x, t,
      packed["w1m"], packed["b1m"],
      packed["wt"], packed["bt"],
      packed["w2"], packed["b2"])

    return out[:B, :output_dim]


def init_params(key, input_dim, output_dim, t_dim):
    ks = jax.random.split(key, 8)
    scale = 0.05
    # weights as (in_features, out_features); biases as (1, out_features)
    return {
        "w1": scale * jax.random.normal(ks[0], (input_dim, output_dim), jnp.float32),
        "b1": scale * jax.random.normal(ks[1], (1, output_dim), jnp.float32),
        "wt": scale * jax.random.normal(ks[2], (t_dim, output_dim), jnp.float32),
        "bt": scale * jax.random.normal(ks[3], (1, output_dim), jnp.float32),
        "w2": scale * jax.random.normal(ks[4], (output_dim, output_dim), jnp.float32),
        "b2": scale * jax.random.normal(ks[5], (1, output_dim), jnp.float32),
        "wm": scale * jax.random.normal(ks[6], (input_dim, output_dim), jnp.float32),
        "bm": scale * jax.random.normal(ks[7], (1, output_dim), jnp.float32),
    }


def reference_forward(x, t, p):
    """Pure-JAX f32 reference mirroring the PyTorch forward."""
    silu = lambda v: v * jax.nn.sigmoid(v)
    h1 = silu(x @ p["w1"] + p["b1"]) + (silu(t) @ p["wt"] + p["bt"])
    h2 = silu(h1 @ p["w2"] + p["b2"])
    return h2 + (x @ p["wm"] + p["bm"])


if __name__ == "__main__":
    B, input_dim, output_dim, t_dim = 8, 16, 32, 128

    key = jax.random.PRNGKey(0)
    kx, kt, kp = jax.random.split(key, 3)
    x = jax.random.normal(kx, (B, input_dim), jnp.float32)
    t = jax.random.normal(kt, (B, t_dim), jnp.float32)
    params = init_params(kp, input_dim, output_dim, t_dim)
    packed = pack_params(params, input_dim, output_dim)

    out = temporal_spatial_resblock(x, t, packed)
    out = jax.block_until_ready(out)

    ref = reference_forward(x, t, params)
    assert out.shape == (B, output_dim)
    # bf16 MXU operands vs. f32 reference -> loose-but-safe tolerance
    assert jnp.allclose(out, ref, atol=3e-2, rtol=3e-2), "mismatch vs reference"

    print("KERNEL_OK")
</pallas_src>

<mosaic_0001>
module attributes {stable_mosaic.version = 11 : i64} {
  func.func @_resblock_kernel(%arg0: i32, %arg1: memref<8x16xf32, #tpu.memory_space<vmem>>, %arg2: memref<8x128xf32, #tpu.memory_space<vmem>>, %arg3: memref<16x256xbf16, #tpu.memory_space<vmem>>, %arg4: memref<1x256xf32, #tpu.memory_space<vmem>>, %arg5: memref<128x128xbf16, #tpu.memory_space<vmem>>, %arg6: memref<1x128xf32, #tpu.memory_space<vmem>>, %arg7: memref<128x128xbf16, #tpu.memory_space<vmem>>, %arg8: memref<1x128xf32, #tpu.memory_space<vmem>>, %arg9: memref<8x128xf32, #tpu.memory_space<vmem>>) attributes {dimension_semantics = [#tpu.dimension_semantics<parallel>], iteration_bounds = array<i64: 1>, scalar_prefetch = 0 : i64, scratch_operands = 0 : i64, tpu.core_type = #tpu.core_type<tc>, window_params = [{transform_indices = @transform_0, window_bounds = array<i64: 8, 16>}, {transform_indices = @transform_1, window_bounds = array<i64: 8, 128>}, {pipeline_mode = #tpu.pipeline_mode<synchronous>, transform_indices = @transform_2, window_bounds = array<i64: 16, 256>}, {pipeline_mode = #tpu.pipeline_mode<synchronous>, transform_indices = @transform_3, window_bounds = array<i64: 1, 256>}, {pipeline_mode = #tpu.pipeline_mode<synchronous>, transform_indices = @transform_4, window_bounds = array<i64: 128, 128>}, {pipeline_mode = #tpu.pipeline_mode<synchronous>, transform_indices = @transform_5, window_bounds = array<i64: 1, 128>}, {pipeline_mode = #tpu.pipeline_mode<synchronous>, transform_indices = @transform_6, window_bounds = array<i64: 128, 128>}, {pipeline_mode = #tpu.pipeline_mode<synchronous>, transform_indices = @transform_7, window_bounds = array<i64: 1, 128>}, {transform_indices = @transform_8, window_bounds = array<i64: 8, 128>}]} {
    %c0 = arith.constant 0 : index
    %c0_0 = arith.constant 0 : index
    %0 = vector.load %arg1[%c0, %c0_0] : memref<8x16xf32, #tpu.memory_space<vmem>>, vector<8x16xf32>
    %1 = arith.truncf %0 : vector<8x16xf32> to vector<8x16xbf16>
    %c0_1 = arith.constant 0 : index
    %c0_2 = arith.constant 0 : index
    %2 = vector.load %arg3[%c0_1, %c0_2] : memref<16x256xbf16, #tpu.memory_space<vmem>>, vector<16x256xbf16>
    %cst = arith.constant dense<0.000000e+00> : vector<8x256xf32>
    %3 = tpu.matmul %1, %2, %cst {dimension_numbers = #tpu.dot_dimension_numbers<[1], [0], [0], [1], [0, 0, 1, 1], [], []>} : vector<8x16xbf16>, vector<16x256xbf16>, vector<8x256xf32> -> vector<8x256xf32>
    %c0_3 = arith.constant 0 : index
    %c0_4 = arith.constant 0 : index
    %4 = vector.load %arg4[%c0_3, %c0_4] : memref<1x256xf32, #tpu.memory_space<vmem>>, vector<1x256xf32>
    %5 = vector.broadcast %4 : vector<1x256xf32> to vector<8x256xf32>
    %6 = arith.addf %3, %5 : vector<8x256xf32>
    %7 = vector.extract_strided_slice %6 {offsets = [0, 0], sizes = [8, 128], strides = [1, 1]} : vector<8x256xf32> to vector<8x128xf32>
    %8 = arith.negf %7 : vector<8x128xf32>
    %9 = math.exp %8 : vector<8x128xf32>
    %cst_5 = arith.constant 1.000000e+00 : f32
    %10 = vector.broadcast %cst_5 : f32 to vector<8x128xf32>
    %11 = arith.addf %10, %9 : vector<8x128xf32>
    %12 = arith.divf %10, %11 : vector<8x128xf32>
    %13 = arith.mulf %7, %12 : vector<8x128xf32>
    %14 = vector.extract_strided_slice %6 {offsets = [0, 128], sizes = [8, 128], strides = [1, 1]} : vector<8x256xf32> to vector<8x128xf32>
    %c0_6 = arith.constant 0 : index
    %c0_7 = arith.constant 0 : index
    %15 = vector.load %arg2[%c0_6, %c0_7] : memref<8x128xf32, #tpu.memory_space<vmem>>, vector<8x128xf32>
    %16 = arith.negf %15 : vector<8x128xf32>
    %17 = math.exp %16 : vector<8x128xf32>
    %cst_8 = arith.constant 1.000000e+00 : f32
    %18 = vector.broadcast %cst_8 : f32 to vector<8x128xf32>
    %19 = arith.addf %18, %17 : vector<8x128xf32>
    %20 = arith.divf %18, %19 : vector<8x128xf32>
    %21 = arith.mulf %15, %20 : vector<8x128xf32>
    %22 = arith.truncf %21 : vector<8x128xf32> to vector<8x128xbf16>
    %c0_9 = arith.constant 0 : index
    %c0_10 = arith.constant 0 : index
    %23 = vector.load %arg5[%c0_9, %c0_10] : memref<128x128xbf16, #tpu.memory_space<vmem>>, vector<128x128xbf16>
    %cst_11 = arith.constant dense<0.000000e+00> : vector<8x128xf32>
    %24 = tpu.matmul %22, %23, %cst_11 {dimension_numbers = #tpu.dot_dimension_numbers<[1], [0], [0], [1], [0, 0, 1, 1], [], []>} : vector<8x128xbf16>, vector<128x128xbf16>, vector<8x128xf32> -> vector<8x128xf32>
    %c0_12 = arith.constant 0 : index
    %c0_13 = arith.constant 0 : index
    %25 = vector.load %arg6[%c0_12, %c0_13] : memref<1x128xf32, #tpu.memory_space<vmem>>, vector<1x128xf32>
    %26 = vector.broadcast %25 : vector<1x128xf32> to vector<8x128xf32>
    %27 = arith.addf %24, %26 : vector<8x128xf32>
    %28 = arith.addf %13, %27 : vector<8x128xf32>
    %29 = arith.truncf %28 : vector<8x128xf32> to vector<8x128xbf16>
    %c0_14 = arith.constant 0 : index
    %c0_15 = arith.constant 0 : index
    %30 = vector.load %arg7[%c0_14, %c0_15] : memref<128x128xbf16, #tpu.memory_space<vmem>>, vector<128x128xbf16>
    %cst_16 = arith.constant dense<0.000000e+00> : vector<8x128xf32>
    %31 = tpu.matmul %29, %30, %cst_16 {dimension_numbers = #tpu.dot_dimension_numbers<[1], [0], [0], [1], [0, 0, 1, 1], [], []>} : vector<8x128xbf16>, vector<128x128xbf16>, vector<8x128xf32> -> vector<8x128xf32>
    %c0_17 = arith.constant 0 : index
    %c0_18 = arith.constant 0 : index
    %32 = vector.load %arg8[%c0_17, %c0_18] : memref<1x128xf32, #tpu.memory_space<vmem>>, vector<1x128xf32>
    %33 = vector.broadcast %32 : vector<1x128xf32> to vector<8x128xf32>
    %34 = arith.addf %31, %33 : vector<8x128xf32>
    %35 = arith.negf %34 : vector<8x128xf32>
    %36 = math.exp %35 : vector<8x128xf32>
    %cst_19 = arith.constant 1.000000e+00 : f32
    %37 = vector.broadcast %cst_19 : f32 to vector<8x128xf32>
    %38 = arith.addf %37, %36 : vector<8x128xf32>
    %39 = arith.divf %37, %38 : vector<8x128xf32>
    %40 = arith.mulf %34, %39 : vector<8x128xf32>
    %41 = arith.addf %40, %14 : vector<8x128xf32>
    %c0_20 = arith.constant 0 : index
    %c0_21 = arith.constant 0 : index
    %42 = vector.load %arg9[%c0_20, %c0_21] : memref<8x128xf32, #tpu.memory_space<vmem>>, vector<8x128xf32>
    tpu.vector_store %arg9[%c0_20, %c0_21], %41 {strides = array<i32>} : memref<8x128xf32, #tpu.memory_space<vmem>>, vector<8x128xf32>,
    return
  }
  func.func @transform_0(%arg0: i32) -> (i32, i32) {
    %c0_i32 = arith.constant 0 : i32
    %c0_i32_0 = arith.constant 0 : i32
    return %arg0, %c0_i32 : i32, i32
  }
  func.func @transform_1(%arg0: i32) -> (i32, i32) {
    %c0_i32 = arith.constant 0 : i32
    %c0_i32_0 = arith.constant 0 : i32
    return %arg0, %c0_i32 : i32, i32
  }
  func.func @transform_2(%arg0: i32) -> (i32, i32) {
    %c0_i32 = arith.constant 0 : i32
    %c0_i32_0 = arith.constant 0 : i32
    %c0_i32_1 = arith.constant 0 : i32
    return %c0_i32, %c0_i32_0 : i32, i32
  }
  func.func @transform_3(%arg0: i32) -> (i32, i32) {
    %c0_i32 = arith.constant 0 : i32
    %c0_i32_0 = arith.constant 0 : i32
    %c0_i32_1 = arith.constant 0 : i32
    return %c0_i32, %c0_i32_0 : i32, i32
  }
  func.func @transform_4(%arg0: i32) -> (i32, i32) {
    %c0_i32 = arith.constant 0 : i32
    %c0_i32_0 = arith.constant 0 : i32
    %c0_i32_1 = arith.constant 0 : i32
    return %c0_i32, %c0_i32_0 : i32, i32
  }
  func.func @transform_5(%arg0: i32) -> (i32, i32) {
    %c0_i32 = arith.constant 0 : i32
    %c0_i32_0 = arith.constant 0 : i32
    %c0_i32_1 = arith.constant 0 : i32
    return %c0_i32, %c0_i32_0 : i32, i32
  }
  func.func @transform_6(%arg0: i32) -> (i32, i32) {
    %c0_i32 = arith.constant 0 : i32
    %c0_i32_0 = arith.constant 0 : i32
    %c0_i32_1 = arith.constant 0 : i32
    return %c0_i32, %c0_i32_0 : i32, i32
  }
  func.func @transform_7(%arg0: i32) -> (i32, i32) {
    %c0_i32 = arith.constant 0 : i32
    %c0_i32_0 = arith.constant 0 : i32
    %c0_i32_1 = arith.constant 0 : i32
    return %c0_i32, %c0_i32_0 : i32, i32
  }
  func.func @transform_8(%arg0: i32) -> (i32, i32) {
    %c0_i32 = arith.constant 0 : i32
    %c0_i32_0 = arith.constant 0 : i32
    return %arg0, %c0_i32 : i32, i32
  }
}

</mosaic_0001>

<bundles_post_ra>
// kernel: tpu_custom_call.1
= control target key start
LH: loop header
LB: loop body
LE: loop exit
PB: predicated region body
PF: predicated region fallthrough
CT: control target
= control target key end

     0   :  { %13 = vsyncpa [#allocation3], 0  ;;  %s877_s0 = inlined_call_operand.hbm [shape: f32[8,16], index: 0, kind: input, shape index: {}]   ;;  %s878_s1 = inlined_call_operand.hbm [shape: f32[8,128], index: 1, kind: input, shape index: {}]   ;;  %s879_s2 = inlined_call_operand.hbm [shape: bf16[16,256], index: 2, kind: input, shape index: {}]   ;;  %s880_s3 = inlined_call_operand.vmem [shape: f32[1,256], index: 3, kind: input, shape index: {}]   ;;  %s881_s4 = inlined_call_operand.hbm [shape: bf16[128,128], index: 4, kind: input, shape index: {}]   ;;  %s882_s5 = inlined_call_operand.vmem [shape: f32[1,128], index: 5, kind: input, shape index: {}]   ;;  %s883_s6 = inlined_call_operand.hbm [shape: bf16[128,128], index: 6, kind: input, shape index: {}]   ;;  %s884_s7 = inlined_call_operand.vmem [shape: f32[1,128], index: 7, kind: input, shape index: {}]   ;;  %s885_s8 = inlined_call_operand.hbm [shape: f32[8,128], index: 8, kind: output, shape index: {}]  }
   0x1   :  { %14 = vsyncpa [#allocation6], 0 }
   0x2   :  { %15 = vsyncpa [#allocation9], 0 }
   0x3   :  { %16 = vsyncpa [#allocation4], 0  ;;  %s698_s27 = smov [#allocation5]   ;;  %s699_s29 = smov [#allocation8]  }
   0x4   :  { %s33_s28 = sshll.u32 %s698_s27, 4  ;;  %s56_s30 = sshll.u32 %s699_s29, 4  ;;  %s34_s28 = int_to_ptr.vmem [resolvable:$true] %s33_s28  ;;  %s756_s30 = int_to_ptr.vmem [resolvable:$true] %s56_s30 }
   0x5   :  { %s558_s11 = scalar_lea.hbm %s878_s1, 128 }
   0x6   :  { %p559_p0 = scmp.ne.s32.totalorder %s878_s1, %s558_s11  ;;  %p562_p1 = scmp.lt.u32.totalorder %s558_s11, %s878_s1 }
   0x8   :  { %p564_p2 = pnand %p562_p1, %p559_p0 }
   0xa   :  { %567 = shalt.err (!%p564_p2)
}
   0xb   :  { %s568_s16 = scalar_lea.vmem %s34_s28, 128  ;;  %p573_p4 = scmp.lt.s32.totalorder %s34_s28, %s34_s28 }
   0xc   :  { %p569_p3 = scmp.ne.s32.totalorder %s34_s28, %s568_s16  ;;  %p574_p5 = scmp.lt.s32.totalorder %s568_s16, %s568_s16 }
   0xe   :  { %p575_p6 = por %p574_p5, %p573_p4 }
  0x10   :  { %p576_p7 = pnand %p575_p6, %p569_p3 }
  0x12   :  { %579 = shalt.err (!%p576_p7)
}
  0x13   :  { %36 = dma.hbm_to_vmem [thread:$0]  %s878_s1, 128, %s34_s28, [#allocation6]  }
  0x14   :  { %s580_s21 = scalar_lea.hbm %s881_s4, 1024 }
  0x15   :  { %p581_p8 = scmp.ne.s32.totalorder %s881_s4, %s580_s21  ;;  %p584_p9 = scmp.lt.u32.totalorder %s580_s21, %s881_s4 }
  0x17   :  { %p586_p10 = pnand %p584_p9, %p581_p8 }
  0x19   :  { %589 = shalt.err (!%p586_p10)
}
  0x1a   :  { %s590_s26 = scalar_lea.vmem %s756_s30, 1024  ;;  %p595_p12 = scmp.lt.s32.totalorder %s756_s30, %s756_s30 }
  0x1b   :  { %p591_p11 = scmp.ne.s32.totalorder %s756_s30, %s590_s26  ;;  %p596_p13 = scmp.lt.s32.totalorder %s590_s26, %s590_s26 }
  0x1d   :  { %p597_p0 = por %p596_p13, %p595_p12 }
  0x1f   :  { %p598_p1 = pnand %p597_p0, %p591_p11 }
  0x21   :  { %601 = shalt.err (!%p598_p1)
}
  0x22   :  { %s700_s1 = smov 64   ;;  %s701_s27 = smov 4  }
  0x23   :  { %62 = dma.hbm_to_vmem [thread:$0]  %s881_s4, 1024, %s756_s30, [#allocation9], %s700_s1, %s700_s1, %s701_s27  }
  0x24   :  { %s702_s9 = smov [#allocation2]   ;;  %s703_s11 = smov [#allocation7]  }
  0x25   :  { %s23_s10 = sshll.u32 %s702_s9, 4  ;;  %s42_s12 = sshll.u32 %s703_s11, 4  ;;  %s24_s10 = int_to_ptr.vmem [resolvable:$true] %s23_s10  ;;  %s790_s12 = int_to_ptr.vmem [resolvable:$true] %s42_s12 }
  0x26   :  { %s602_s15 = scalar_lea.hbm %s877_s0, 128 }
  0x27   :  { %p603_p2 = scmp.ne.s32.totalorder %s877_s0, %s602_s15  ;;  %p606_p3 = scmp.lt.u32.totalorder %s602_s15, %s877_s0 }
  0x29   :  { %p608_p4 = pnand %p606_p3, %p603_p2 }
  0x2b   :  { %611 = shalt.err (!%p608_p4)
}
  0x2c   :  { %s612_s4 = scalar_lea.vmem %s24_s10, 128  ;;  %p617_p6 = scmp.lt.s32.totalorder %s24_s10, %s24_s10 }
  0x2d   :  { %p613_p5 = scmp.ne.s32.totalorder %s24_s10, %s612_s4  ;;  %p618_p7 = scmp.lt.s32.totalorder %s612_s4, %s612_s4 }
  0x2f   :  { %p619_p8 = por %p618_p7, %p617_p6 }
  0x31   :  { %p620_p9 = pnand %p619_p8, %p613_p5 }
  0x33   :  { %623 = shalt.err (!%p620_p9)
}
  0x34   :  { %26 = dma.hbm_to_vmem [thread:$0]  %s877_s0, 128, %s24_s10, [#allocation3]  }
  0x35   :  { %s624_s23 = scalar_lea.hbm %s879_s2, 256 }
  0x36   :  { %p625_p10 = scmp.ne.s32.totalorder %s879_s2, %s624_s23  ;;  %p628_p11 = scmp.lt.u32.totalorder %s624_s23, %s879_s2 }
  0x38   :  { %p630_p12 = pnand %p628_p11, %p625_p10 }
  0x3a   :  { %633 = shalt.err (!%p630_p12)
}
  0x3b   :  { %s634_s29 = scalar_lea.vmem %s790_s12, 256  ;;  %p639_p0 = scmp.lt.s32.totalorder %s790_s12, %s790_s12 }
  0x3c   :  { %p635_p13 = scmp.ne.s32.totalorder %s790_s12, %s634_s29  ;;  %p640_p1 = scmp.lt.s32.totalorder %s634_s29, %s634_s29 }
  0x3e   :  { %p641_p2 = por %p640_p1, %p639_p0 }
  0x40   :  { %p642_p3 = pnand %p641_p2, %p635_p13 }
  0x42   :  { %645 = shalt.err (!%p642_p3)
}
  0x43   :  { %s704_s0 = smov 128   ;;  %s705_s9 = smov 8  }
  0x44   :  { %48 = dma.hbm_to_vmem [thread:$0]  %s879_s2, 256, %s790_s12, [#allocation6], %s704_s0, %s704_s0, %s705_s9  }
  0x45   :  { %s706_s13 = smov [#allocation10]   ;;  %s646_s17 = scalar_lea.hbm %s883_s6, 1024 }
  0x46   :  { %s70_s14 = sshll.u32 %s706_s13, 4  ;;  %p647_p4 = scmp.ne.s32.totalorder %s883_s6, %s646_s17  ;;  %s71_s14 = int_to_ptr.vmem [resolvable:$true] %s70_s14 }
  0x47   :  { %p650_p5 = scmp.lt.u32.totalorder %s646_s17, %s883_s6 }
  0x49   :  { %p652_p6 = pnand %p650_p5, %p647_p4 }
  0x4b   :  { %655 = shalt.err (!%p652_p6)
}
  0x4c   :  { %s656_s20 = scalar_lea.vmem %s71_s14, 1024  ;;  %p661_p8 = scmp.lt.s32.totalorder %s71_s14, %s71_s14 }
  0x4d   :  { %p657_p7 = scmp.ne.s32.totalorder %s71_s14, %s656_s20  ;;  %p662_p9 = scmp.lt.s32.totalorder %s656_s20, %s656_s20 }
  0x4f   :  { %p663_p10 = por %p662_p9, %p661_p8 }
  0x51   :  { %p664_p11 = pnand %p663_p10, %p657_p7 }
  0x53   :  { %667 = shalt.err (!%p664_p11)
}
  0x54   :  { %76 = dma.hbm_to_vmem [thread:$0]  %s883_s6, 1024, %s71_s14, [#allocation9], %s700_s1, %s700_s1, %s701_s27  }
  0x55   :  { %690 = dma.done.wait [#allocation3], 128  }
  0x56   :  { %691 = vsyncadd [#allocation3], 4294967168 }
  0x57   :  { %692 = dma.done.wait [#allocation6], 384  }
  0x58   :  { %693 = vsyncadd [#allocation6], 4294966912 }
  0x59   :  { %694 = dma.done.wait [#allocation9], 2048  }
  0x5a   :  { %695 = vsyncadd [#allocation9], 4294965248  ;;  %v707_v0 = vmov 0.0   ;;  %v708_v1 = vmov 0   ;;  %vm709_vm0 = vmmov 0   ;;  %v529_v3 = vld [vmem:[#allocation8] sm:$0xff]   ;;  %v101_v29 = vlaneseq }
  0x5b   :  { %474 = vmatprep.subr.bf16.mxu1 %v707_v0  ;;  %157 = vmatprep.mubr.bf16.mxu0 %v708_v1  ;;  %v527_v2 = vld [vmem:[#allocation7 + $0x4] ss:$8 sps:$4 sm:$0xff]   ;;  %v530_v4 = vld [vmem:[#allocation7] ss:$8 sps:$4 sm:$0xff]   ;;  %v95_v5 = vld [vmem:[#allocation2] sm:$0xff]  ;;  %vm121_vm1 = vcmask 130048  }
  0x5c   :  { %490 = vmatprep.mubr.msk.bf16.mxu1 %vm709_vm0, %v707_v0  ;;  %125 = vmatprep.subr.bf16.mxu0 %v527_v2  ;;  %v96_v6 = vpack.c.bf16 %v95_v5, %v95_v5  ;;  %v531_v7 = vld [vmem:[#allocation8 + $0x8] sm:$0xff]   ;;  %v532_v8 = vld [vmem:[#allocation8 + $0x10] sm:$0xff]   ;;  %v533_v10 = vld [vmem:[#allocation8 + $0x18] sm:$0xff]   ;;  %v102_v30 = vshrl.u32 %v101_v29, 7 }
  0x5d   :  { %475 = vmatpush3.bf16.msra.mxu1 %v529_v3  ;;  %126 = vmatpush1.bf16.msra.mxu0 %v530_v4  ;;  %v173_v9 = vld [vmem:[#allocation5] sm:$0xff]  ;;  %v534_v12 = vld [vmem:[#allocation8 + $0x20] sm:$0xff]   ;;  %v536_v15 = vld [vmem:[#allocation8 + $0x30] sm:$0xff]  }
  0x5e   :  { %476 = vmatprep.subr.bf16.mxu1 %v707_v0  ;;  %494 = vmatprep.subr.bf16.mxu0 %v707_v0  ;;  %v436_v11 = vmul.f32 -1.442695, %v173_v9  ;;  %v535_v13 = vld [vmem:[#allocation8 + $0x28] sm:$0xff]   ;;  %v537_v17 = vld [vmem:[#allocation8 + $0x38] sm:$0xff]   ;;  %v538_v21 = vld [vmem:[#allocation10] sm:$0xff]   ;;  %v103_v31 = vsub.s32 0, %v102_v30 }
  0x5f   :  { %v539_v22 = vld [vmem:[#allocation10 + $0x8] sm:$0xff]   ;;  %v540_v23 = vld [vmem:[#allocation10 + $0x10] sm:$0xff]   ;;  %v541_v24 = vld [vmem:[#allocation10 + $0x18] sm:$0xff]   ;;  %v107_v61 = vsub.s32 1, %v102_v30 }
  0x60   :  { %434 = vmatmul.mubr.msk.bf16.vlgmr.msra.gmra.mrb[0].mxu0 %vm121_vm1, %v96_v6  ;;  %546 = vpow2.f32 %v436_v11  ;;  %v542_v25 = vld [vmem:[#allocation10 + $0x20] sm:$0xff]   ;;  %v543_v26 = vld [vmem:[#allocation10 + $0x28] sm:$0xff]   ;;  %v544_v27 = vld [vmem:[#allocation10 + $0x30] sm:$0xff]  }
  0x61   :  { %477 = vmatpush3.bf16.msra.mxu1 %v531_v7  ;;  %510 = vmatprep.mubr.msk.bf16.mxu0 %vm709_vm0, %v707_v0  ;;  %v545_v28 = vld [vmem:[#allocation10 + $0x38] sm:$0xff]   ;;  %v99_v32 = vld [vmem:[%s880_s3] sm:$0x3] }
  0x62   :  { %478 = vmatprep.subr.bf16.mxu1 %v707_v0  ;;  %495 = vmatpush3.bf16.msra.mxu0 %v538_v21  ;;  %v104_v33 = vrot.slane %v99_v32, %v103_v31  ;;  %v437_v43 = vld [vmem:[%s882_s5] ss:$0 sm:$0xff]  ;;  %v108_v62 = vrot.slane %v99_v32, %v107_v61  ;;  %s710_s5 = smov [#allocation11]  }
  0x63   :  { %496 = vmatprep.subr.bf16.mxu0 %v707_v0  ;;  %v446_v52 = vld [vmem:[%s884_s7] ss:$0 sm:$0xff]  ;;  %s421_s23 = sshll.u32 %s710_s5, 4  ;;  %s422_s23 = int_to_ptr.vmem [resolvable:$true] %s421_s23 }
  0x64   :  { %s668_s7 = scalar_lea.vmem %s422_s23, 128  ;;  %p673_p13 = scmp.lt.s32.totalorder %s422_s23, %s422_s23 }
  0x65   :  { %479 = vmatpush3.bf16.msra.mxu1 %v532_v8  ;;  %p669_p12 = scmp.ne.s32.totalorder %s422_s23, %s668_s7  ;;  %p674_p0 = scmp.lt.s32.totalorder %s668_s7, %s668_s7 }
  0x66   :  { %480 = vmatprep.subr.bf16.mxu1 %v707_v0  ;;  %497 = vmatpush3.bf16.msra.mxu0 %v539_v22 }
  0x67   :  { %498 = vmatprep.subr.bf16.mxu0 %v707_v0  ;;  %p675_p1 = por %p674_p0, %p673_p13 }
  0x69   :  { %481 = vmatpush3.bf16.msra.mxu1 %v533_v10  ;;  %p676_p2 = pnand %p675_p1, %p669_p12 }
  0x6a   :  { %482 = vmatprep.subr.bf16.mxu1 %v707_v0  ;;  %v547_v14 = vpop.eup %546  ;;  %499 = vmatpush3.bf16.msra.mxu0 %v540_v23 }
  0x6b   :  { %v177_v16 = vadd.f32 1.0, %v547_v14  ;;  %500 = vmatprep.subr.bf16.mxu0 %v707_v0 }
  0x6d   :  { %483 = vmatpush3.bf16.msra.mxu1 %v534_v12  ;;  %548 = vrcp.f32 %v177_v16 }
  0x6e   :  { %484 = vmatprep.subr.bf16.mxu1 %v707_v0  ;;  %501 = vmatpush3.bf16.msra.mxu0 %v541_v24 }
  0x6f   :  { %502 = vmatprep.subr.bf16.mxu0 %v707_v0 }
  0x71   :  { %485 = vmatpush3.bf16.msra.mxu1 %v535_v13 }
  0x72   :  { %486 = vmatprep.subr.bf16.mxu1 %v707_v0  ;;  %503 = vmatpush3.bf16.msra.mxu0 %v542_v25 }
  0x73   :  { %504 = vmatprep.subr.bf16.mxu0 %v707_v0 }
  0x75   :  { %487 = vmatpush3.bf16.msra.mxu1 %v536_v15 }
  0x76   :  { %488 = vmatprep.subr.bf16.mxu1 %v707_v0  ;;  %505 = vmatpush3.bf16.msra.mxu0 %v543_v26 }
  0x77   :  { %v549_v18 = vpop.eup %548  ;;  %506 = vmatprep.subr.bf16.mxu0 %v707_v0 }
  0x78   :  { %v180_v19 = vmul.f32 %v549_v18, %v173_v9 }
  0x79   :  { %489 = vmatpush3.bf16.msra.mxu1 %v537_v17 }
  0x7a   :  { %v181_v20 = vpack.c.bf16 %v180_v19, %v180_v19  ;;  %507 = vmatpush3.bf16.msra.mxu0 %v544_v27 }
  0x7b   :  { %508 = vmatprep.subr.bf16.mxu0 %v707_v0 }
  0x7c   :  { %491 = vmatmul.mubr.bf16.vlgmr.msra.gmra.mrb[0].mxu1 %v181_v20 }
  0x7e   :  { %509 = vmatpush3.bf16.msra.mxu0 %v545_v28 }
 0x133   :  { %v159_v34 = vpop.f32.mrb[0].mxu0 }
 0x134   :  { %v160_v35 = vadd.f32 %v159_v34, %v104_v33  ;;  %v161_v36 = vpop.f32.mrb[1].mxu0 }
 0x135   :  { %v163_v37 = vpop.f32.mrb[2].mxu0  ;;  %v162_v0 = vadd.f32 %v161_v36, %v108_v62 }
 0x136   :  { %v435_v38 = vmul.f32 -1.442695, %v160_v35  ;;  %v164_v39 = vpop.f32.mrb[3].mxu0 }
 0x138   :  { %550 = vpow2.f32 %v435_v38 }
 0x142   :  { %v551_v40 = vpop.eup %550 }
 0x143   :  { %v169_v41 = vadd.f32 1.0, %v551_v40 }
 0x145   :  { %552 = vrcp.f32 %v169_v41 }
 0x14f   :  { %v553_v42 = vpop.eup %552  ;;  %v287_v45 = vpop.f32.mrb[0].mxu1 }
 0x150   :  { %v172_v44 = vmul.f32 %v553_v42, %v160_v35  ;;  %v288_v46 = vadd.f32 %v437_v43, %v287_v45  ;;  %v492_v47 = vpop.f32.mrb[1].mxu1 }
 0x151   :  { %v290_v48 = vpop.f32.mrb[2].mxu1 }
 0x152   :  { %v293_v49 = vadd.f32 %v288_v46, %v172_v44  ;;  %v493_v50 = vpop.f32.mrb[3].mxu1 }
 0x154   :  { %v294_v51 = vpack.c.bf16 %v293_v49, %v293_v49 }
 0x156   :  { %511 = vmatmul.mubr.bf16.vlgmr.msra.gmra.mrb[4].mxu0 %v294_v51 }
 0x229   :  { %v400_v53 = vpop.f32.mrb[4].mxu0 }
 0x22a   :  { %v401_v54 = vadd.f32 %v446_v52, %v400_v53  ;;  %v512_v55 = vpop.f32.mrb[5].mxu0 }
 0x22b   :  { %v403_v56 = vpop.f32.mrb[6].mxu0 }
 0x22c   :  { %v455_v57 = vmul.f32 -1.442695, %v401_v54  ;;  %v513_v58 = vpop.f32.mrb[7].mxu0 }
 0x22e   :  { %554 = vpow2.f32 %v455_v57 }
 0x238   :  { %v555_v59 = vpop.eup %554 }
 0x239   :  { %v409_v60 = vadd.f32 1.0, %v555_v59 }
 0x23b   :  { %556 = vrcp.f32 %v409_v60 }
 0x245   :  { %v557_v63 = vpop.eup %556 }
 0x246   :  { %v412_v1 = vmul.f32 %v557_v63, %v401_v54 }
 0x248   :  { %v413_v2 = vadd.f32 %v412_v1, %v162_v0 }
 0x24a   :  { %414 = vst [vmem:[#allocation11] sm:$0xff] %v413_v2 }
 0x24b   :  { %679 = shalt.err (!%p676_p2)
}
 0x24c   :  { %s680_s26 = scalar_lea.hbm %s885_s8, 128 }
 0x24d   :  { %p681_p3 = scmp.ne.s32.totalorder %s885_s8, %s680_s26  ;;  %p684_p4 = scmp.lt.u32.totalorder %s680_s26, %s885_s8 }
 0x24f   :  { %p686_p5 = pnand %p684_p4, %p681_p3 }
 0x251   :  { %689 = shalt.err (!%p686_p5)
}
 0x252   :  { %424 = dma.vmem_to_hbm [thread:$0]  %s422_s23, 128, %s885_s8, [#allocation4]  }
 0x253   :  { %696 = dma.done.wait [#allocation4], 128  }
 0x254   :  { %697 = vsyncadd [#allocation4], 4294967168 }
 0x255   :  { %428 = vsyncpa [#allocation3], 1 }
 0x256   :  { %429 = vsyncpa [#allocation6], 1 }
 0x257   :  { %430 = vsyncpa [#allocation9], 1 }
 0x258   :  { %431 = vsyncpa [#allocation4], 1 }

</bundles_post_ra>
